<compile_context>
chip_gen: v6e
topology: v6e:2x2x1
jax: 0.10.0
libtpu: 0.0.40
codegen_flags: <defaults>
</compile_context>

<pallas_src>
import functools

import jax
import jax.numpy as jnp
from jax.experimental import pallas as pl
from jax.experimental.pallas import tpu as pltpu

BN_EPS = 1e-5


def _round_up(x, m):
    return (x + m - 1) // m * m


def _cdiv(a, b):
    return (a + b - 1) // b


def maesurv_kernel(x1_ref, x2_ref, w_ref, out_ref, *, meta):
    """Fused MAESurv forward for one batch tile.

    x1_ref : (TB, in1)  view-1 inputs
    x2_ref : (TB, in2)  view-2 inputs
    w_ref  : (WR, LW)   packed weights + bias/BN/final-row slab (VMEM-resident)
    out_ref: (TB, 1)    risk scores
    """
    in1, in2, D, H0, H1, ns = (meta["in1"], meta["in2"], meta["D"],
                               meta["H0"], meta["H1"], meta["ns"])
    ro_in1, ro_in2, ro_a, ro_b, ro_s0, ro_v = meta["row_offs"]
    f32 = jnp.float32

    # Static windows into the packed slab (block row offsets are 8-aligned).
    w_in1 = w_ref[ro_in1:ro_in1 + in1, :D]   # view-1 Coxnnet weight (cols 0:d1)
    w_in2 = w_ref[ro_in2:ro_in2 + in2, :D]   # view-2 Coxnnet weight (cols d1:D)
    w_a   = w_ref[ro_a:ro_a + D, :H0]        # blkdiag(w_e1a, w_e2a)
    w_b   = w_ref[ro_b:ro_b + H0, :H1]       # blkdiag(w_e1b, w_e2b)
    w_s0  = w_ref[ro_s0:ro_s0 + H1, :ns]     # 0.5*[w_s0; w_s0]: view-mean folded

    b_in     = w_ref[ro_v + 0:ro_v + 1, :D]
    b_a      = w_ref[ro_v + 1:ro_v + 2, :H0]
    b_b      = w_ref[ro_v + 2:ro_v + 3, :H1]
    b_s0     = w_ref[ro_v + 3:ro_v + 4, :ns]
    bn_scale = w_ref[ro_v + 4:ro_v + 5, :ns]   # gamma * rsqrt(var + eps)
    bn_shift = w_ref[ro_v + 5:ro_v + 6, :ns]   # beta - mean * scale
    w_s1     = w_ref[ro_v + 6:ro_v + 7, :ns]   # Linear(ns, 1, bias=False) row

    # Coxnnet encoders for both views: each partial product lands in a disjoint
    # lane range of the packed weight, so a plain add reproduces concat(h1, h2)
    # without any wrapper-side concatenate of x1/x2.
    h = jnp.tanh(jnp.dot(x1_ref[...], w_in1, preferred_element_type=f32)
                 + jnp.dot(x2_ref[...], w_in2, preferred_element_type=f32)
                 + b_in)

    # encoder_one / encoder_two: Linear -> ReLU -> Linear (block-diagonal).
    a = jnp.maximum(jnp.dot(h, w_a, preferred_element_type=f32) + b_a, 0.0)
    e = jnp.dot(a, w_b, preferred_element_type=f32) + b_b          # (TB, 2*h1)

    # surv_net: Linear (with 'sum' fusion folded in) -> ReLU -> BN(folded)
    # -> Dropout(identity) -> final Linear as VPU multiply + lane reduce.
    s = jnp.maximum(jnp.dot(e, w_s0, preferred_element_type=f32) + b_s0, 0.0)
    s = s * bn_scale + bn_shift
    out_ref[...] = jnp.sum(s * w_s1, axis=-1, keepdims=True)       # (TB, 1)


def pack_params(p, in_dims, d_dims, hidden_dims, ns):
    """Pack all 19 parameter arrays into one f32 VMEM slab + static metadata."""
    assert len(hidden_dims) == 2, "kernel implements the 2-layer encoder case"
    in1, in2 = in_dims
    d1, d2 = d_dims
    h0, h1 = hidden_dims
    D, H0, H1 = d1 + d2, 2 * h0, 2 * h1

    def blkdiag(a, b):
        r1, c1 = a.shape
        r2, c2 = b.shape
        z = jnp.zeros((r1 + r2, c1 + c2), jnp.float32)
        z = z.at[:r1, :c1].set(a)
        z = z.at[r1:, c1:].set(b)
        return z

    w_a = blkdiag(p["w_e1a"], p["w_e2a"])                       # (D, H0)
    w_b = blkdiag(p["w_e1b"], p["w_e2b"])                       # (H0, H1)
    # Fold the two-view mean into the surv_net first Linear: fused @ w_s0
    # == e @ (0.5 * [w_s0; w_s0]).
    w_s0f = 0.5 * jnp.concatenate([p["w_s0"], p["w_s0"]], axis=0)   # (H1, ns)

    # (block, column offset) pairs; each block starts at an 8-aligned row.
    blocks = [
        (p["w_in1"], 0),    # cols [0:d1)
        (p["w_in2"], d1),   # cols [d1:D)
        (w_a, 0),
        (w_b, 0),
        (w_s0f, 0),
    ]

    # Fold BN (inference) to one FMA: scale = g/sqrt(v+eps), shift = b - m*scale.
    bn_scale = p["bn_g"] * jax.lax.rsqrt(p["bn_v"] + BN_EPS)
    bn_shift = p["bn_b"] - p["bn_m"] * bn_scale
    vec_rows = [
        jnp.concatenate([p["b_in1"], p["b_in2"]], axis=1),   # (1, D)
        jnp.concatenate([p["b_e1a"], p["b_e2a"]], axis=1),   # (1, H0)
        jnp.concatenate([p["b_e1b"], p["b_e2b"]], axis=1),   # (1, H1)
        p["b_s0"],                                           # (1, ns)
        bn_scale,                                            # (1, ns)
        bn_shift,                                            # (1, ns)
        p["w_s1"].T,                                         # (1, ns)
    ]

    LW = _round_up(max(D, H0, H1, ns), 128)      # lane-dense slab width
    row_offs, rows = [], 0
    for blk, _ in blocks:
        row_offs.append(rows)
        rows += _round_up(blk.shape[0], 8)       # keep 8-aligned row offsets
    ro_v = rows                                  # bias/BN/final-weight rows
    rows += _round_up(len(vec_rows), 8)

    wslab = jnp.zeros((rows, LW), jnp.float32)
    for (blk, coff), off in zip(blocks, row_offs):
        wslab = wslab.at[off:off + blk.shape[0],
                         coff:coff + blk.shape[1]].set(blk)
    for i, v in enumerate(vec_rows):
        wslab = wslab.at[ro_v + i, :v.shape[1]].set(v[0])

    meta = dict(in1=in1, in2=in2, D=D, H0=H0, H1=H1, ns=ns,
                row_offs=tuple(row_offs) + (ro_v,))
    return wslab, meta


def maesurv_forward(x1, x2, wslab, meta, *, max_tile_b=2048):
    """Returns (B, 1) risk scores. Batch is tiled along a parallel grid axis."""
    B = x1.shape[0]
    x1 = x1.astype(jnp.float32)
    x2 = x2.astype(jnp.float32)

    # Big batch tiles to amortize per-step pipeline overhead, but keep >= 2
    # grid steps for large batches so both v7x TensorCores get work. No
    # wrapper-side concat or pad: partial last blocks are read-padded /
    # write-masked by Pallas (rows are independent, so padded rows are inert).
    Bp8 = _round_up(B, 8)
    num_tiles = _cdiv(Bp8, max_tile_b)
    if Bp8 >= 2048:
        num_tiles = max(num_tiles, 2)
    TB = max(8, min(max_tile_b, _round_up(_cdiv(Bp8, num_tiles), 8)))
    grid = _cdiv(B, TB)

    kernel = functools.partial(maesurv_kernel, meta=meta)
    out = pl.pallas_call(
        kernel,
        out_shape=jax.ShapeDtypeStruct((B, 1), jnp.float32),
        grid_spec=pl.GridSpec(
            grid=(grid,),
            in_specs=[
                pl.BlockSpec((TB, x1.shape[1]), lambda i: (i, 0)),
                pl.BlockSpec((TB, x2.shape[1]), lambda i: (i, 0)),
                # Parameter slab maps to block (0, 0) for every grid step:
                # fetched once, stays VMEM-resident across batch tiles.
                pl.BlockSpec(wslab.shape, lambda i: (0, 0)),
            ],
            out_specs=pl.BlockSpec((TB, 1), lambda i: (i, 0)),
        ),
        compiler_params=pltpu.CompilerParams(
            dimension_semantics=("parallel",)),
    )(x1, x2, wslab)
    return out


def init_params(key, in_dims, d_dims, hidden_dims, ns):
    """Deterministic synthetic init. Linear weights stored as (in, out)."""
    keys = iter(jax.random.split(key, 32))

    def lin(k, din, dout):
        return jax.random.normal(k, (din, dout), jnp.float32) * (1.0 / jnp.sqrt(din))

    def bias(k, dout):
        return jax.random.normal(k, (1, dout), jnp.float32) * 0.01

    h0, h1 = hidden_dims[0], hidden_dims[-1]
    return {
        # Coxnnet encoders
        "w_in1": lin(next(keys), in_dims[0], d_dims[0]),
        "b_in1": bias(next(keys), d_dims[0]),
        "w_in2": lin(next(keys), in_dims[1], d_dims[1]),
        "b_in2": bias(next(keys), d_dims[1]),
        # encoder_one
        "w_e1a": lin(next(keys), d_dims[0], h0),
        "b_e1a": bias(next(keys), h0),
        "w_e1b": lin(next(keys), h0, h1),
        "b_e1b": bias(next(keys), h1),
        # encoder_two
        "w_e2a": lin(next(keys), d_dims[1], h0),
        "b_e2a": bias(next(keys), h0),
        "w_e2b": lin(next(keys), h0, h1),
        "b_e2b": bias(next(keys), h1),
        # surv_net
        "w_s0": lin(next(keys), h1, ns),
        "b_s0": bias(next(keys), ns),
        "bn_g": jnp.ones((1, ns), jnp.float32),
        "bn_b": jnp.zeros((1, ns), jnp.float32),
        "bn_m": jnp.zeros((1, ns), jnp.float32),
        "bn_v": jnp.ones((1, ns), jnp.float32),
        "w_s1": lin(next(keys), ns, 1),
    }


def reference_forward(x1, x2, p):
    """Pure-JAX reference (matches the PyTorch module in inference mode)."""
    h1 = jnp.tanh(x1 @ p["w_in1"] + p["b_in1"])
    h2 = jnp.tanh(x2 @ p["w_in2"] + p["b_in2"])
    e1 = jnp.maximum(h1 @ p["w_e1a"] + p["b_e1a"], 0.0) @ p["w_e1b"] + p["b_e1b"]
    e2 = jnp.maximum(h2 @ p["w_e2a"] + p["b_e2a"], 0.0) @ p["w_e2b"] + p["b_e2b"]
    fused = (e1 + e2) * 0.5                      # torch.stack(...).mean(-1)
    s = jnp.maximum(fused @ p["w_s0"] + p["b_s0"], 0.0)
    s = (s - p["bn_m"]) * jax.lax.rsqrt(p["bn_v"] + BN_EPS) * p["bn_g"] + p["bn_b"]
    return s @ p["w_s1"]


if __name__ == "__main__":
    # Small shapes consistent with the module's forward.
    in_dims = (32, 24)
    d_dims = (16, 16)
    hidden_dims = (32, 16)
    ns = 8

    key = jax.random.PRNGKey(0)
    kp, kx = jax.random.split(key)
    params = init_params(kp, in_dims, d_dims, hidden_dims, ns)
    wslab, meta = pack_params(params, in_dims, d_dims, hidden_dims, ns)

    # (B, max_tile_b) cases: single full block, and multi-step grid with a
    # partial tail block (exercises Pallas read-padding / write-masking).
    for B, tile in ((8, 2048), (200, 64)):
        kx, k1, k2 = jax.random.split(kx, 3)
        x1 = jax.random.normal(k1, (B, in_dims[0]), jnp.float32)
        x2 = jax.random.normal(k2, (B, in_dims[1]), jnp.float32)

        out = jax.block_until_ready(
            maesurv_forward(x1, x2, wslab, meta, max_tile_b=tile))
        ref = jax.block_until_ready(reference_forward(x1, x2, params))

        assert out.shape == (B, 1), out.shape
        assert jnp.allclose(out, ref, atol=1e-4, rtol=1e-4), (B, out, ref)

    print("KERNEL_OK")
</pallas_src>

<mosaic_0001>
module attributes {stable_mosaic.version = 11 : i64} {
  func.func @maesurv_kernel(%arg0: i32, %arg1: memref<8x32xf32, #tpu.memory_space<vmem>>, %arg2: memref<8x24xf32, #tpu.memory_space<vmem>>, %arg3: memref<192x128xf32, #tpu.memory_space<vmem>>, %arg4: memref<8x1xf32, #tpu.memory_space<vmem>>) attributes {dimension_semantics = [#tpu.dimension_semantics<parallel>], iteration_bounds = array<i64: 1>, scalar_prefetch = 0 : i64, scratch_operands = 0 : i64, tpu.core_type = #tpu.core_type<tc>, window_params = [{transform_indices = @transform_0, window_bounds = array<i64: 8, 32>}, {transform_indices = @transform_1, window_bounds = array<i64: 8, 24>}, {pipeline_mode = #tpu.pipeline_mode<synchronous>, transform_indices = @transform_2, window_bounds = array<i64: 192, 128>}, {transform_indices = @transform_3, window_bounds = array<i64: 8, 1>}]} {
    %c0 = arith.constant 0 : index
    %c0_0 = arith.constant 0 : index
    %0 = vector.load %arg3[%c0, %c0_0] : memref<192x128xf32, #tpu.memory_space<vmem>>, vector<32x32xf32>
    %c32 = arith.constant 32 : index
    %c0_1 = arith.constant 0 : index
    %1 = vector.load %arg3[%c32, %c0_1] : memref<192x128xf32, #tpu.memory_space<vmem>>, vector<24x32xf32>
    %c56 = arith.constant 56 : index
    %c0_2 = arith.constant 0 : index
    %2 = vector.load %arg3[%c56, %c0_2] : memref<192x128xf32, #tpu.memory_space<vmem>>, vector<32x64xf32>
    %c88 = arith.constant 88 : index
    %c0_3 = arith.constant 0 : index
    %3 = vector.load %arg3[%c88, %c0_3] : memref<192x128xf32, #tpu.memory_space<vmem>>, vector<64x32xf32>
    %c152 = arith.constant 152 : index
    %c0_4 = arith.constant 0 : index
    %4 = vector.load %arg3[%c152, %c0_4] : memref<192x128xf32, #tpu.memory_space<vmem>>, vector<32x8xf32>
    %c184 = arith.constant 184 : index
    %c0_5 = arith.constant 0 : index
    %5 = vector.load %arg3[%c184, %c0_5] : memref<192x128xf32, #tpu.memory_space<vmem>>, vector<1x32xf32>
    %c185 = arith.constant 185 : index
    %c0_6 = arith.constant 0 : index
    %6 = vector.load %arg3[%c185, %c0_6] : memref<192x128xf32, #tpu.memory_space<vmem>>, vector<1x64xf32>
    %c186 = arith.constant 186 : index
    %c0_7 = arith.constant 0 : index
    %7 = vector.load %arg3[%c186, %c0_7] : memref<192x128xf32, #tpu.memory_space<vmem>>, vector<1x32xf32>
    %c187 = arith.constant 187 : index
    %c0_8 = arith.constant 0 : index
    %8 = vector.load %arg3[%c187, %c0_8] : memref<192x128xf32, #tpu.memory_space<vmem>>, vector<1x8xf32>
    %c188 = arith.constant 188 : index
    %c0_9 = arith.constant 0 : index
    %9 = vector.load %arg3[%c188, %c0_9] : memref<192x128xf32, #tpu.memory_space<vmem>>, vector<1x8xf32>
    %c189 = arith.constant 189 : index
    %c0_10 = arith.constant 0 : index
    %10 = vector.load %arg3[%c189, %c0_10] : memref<192x128xf32, #tpu.memory_space<vmem>>, vector<1x8xf32>
    %c190 = arith.constant 190 : index
    %c0_11 = arith.constant 0 : index
    %11 = vector.load %arg3[%c190, %c0_11] : memref<192x128xf32, #tpu.memory_space<vmem>>, vector<1x8xf32>
    %c0_12 = arith.constant 0 : index
    %c0_13 = arith.constant 0 : index
    %12 = vector.load %arg1[%c0_12, %c0_13] : memref<8x32xf32, #tpu.memory_space<vmem>>, vector<8x32xf32>
    %cst = arith.constant dense<0.000000e+00> : vector<8x32xf32>
    %13 = tpu.matmul %12, %0, %cst {dimension_numbers = #tpu.dot_dimension_numbers<[1], [0], [0], [1], [0, 0, 1, 1], [], []>} : vector<8x32xf32>, vector<32x32xf32>, vector<8x32xf32> -> vector<8x32xf32>
    %c0_14 = arith.constant 0 : index
    %c0_15 = arith.constant 0 : index
    %14 = vector.load %arg2[%c0_14, %c0_15] : memref<8x24xf32, #tpu.memory_space<vmem>>, vector<8x24xf32>
    %cst_16 = arith.constant dense<0.000000e+00> : vector<8x32xf32>
    %15 = tpu.matmul %14, %1, %cst_16 {dimension_numbers = #tpu.dot_dimension_numbers<[1], [0], [0], [1], [0, 0, 1, 1], [], []>} : vector<8x24xf32>, vector<24x32xf32>, vector<8x32xf32> -> vector<8x32xf32>
    %16 = arith.addf %13, %15 : vector<8x32xf32>
    %17 = vector.broadcast %5 : vector<1x32xf32> to vector<8x32xf32>
    %18 = arith.addf %16, %17 : vector<8x32xf32>
    %19 = math.tanh %18 : vector<8x32xf32>
    %cst_17 = arith.constant dense<0.000000e+00> : vector<8x64xf32>
    %20 = tpu.matmul %19, %2, %cst_17 {dimension_numbers = #tpu.dot_dimension_numbers<[1], [0], [0], [1], [0, 0, 1, 1], [], []>} : vector<8x32xf32>, vector<32x64xf32>, vector<8x64xf32> -> vector<8x64xf32>
    %21 = vector.broadcast %6 : vector<1x64xf32> to vector<8x64xf32>
    %22 = arith.addf %20, %21 : vector<8x64xf32>
    %cst_18 = arith.constant 0.000000e+00 : f32
    %23 = vector.broadcast %cst_18 : f32 to vector<8x64xf32>
    %24 = arith.maximumf %22, %23 : vector<8x64xf32>
    %cst_19 = arith.constant dense<0.000000e+00> : vector<8x32xf32>
    %25 = tpu.matmul %24, %3, %cst_19 {dimension_numbers = #tpu.dot_dimension_numbers<[1], [0], [0], [1], [0, 0, 1, 1], [], []>} : vector<8x64xf32>, vector<64x32xf32>, vector<8x32xf32> -> vector<8x32xf32>
    %26 = vector.broadcast %7 : vector<1x32xf32> to vector<8x32xf32>
    %27 = arith.addf %25, %26 : vector<8x32xf32>
    %cst_20 = arith.constant dense<0.000000e+00> : vector<8x8xf32>
    %28 = tpu.matmul %27, %4, %cst_20 {dimension_numbers = #tpu.dot_dimension_numbers<[1], [0], [0], [1], [0, 0, 1, 1], [], []>} : vector<8x32xf32>, vector<32x8xf32>, vector<8x8xf32> -> vector<8x8xf32>
    %29 = vector.broadcast %8 : vector<1x8xf32> to vector<8x8xf32>
    %30 = arith.addf %28, %29 : vector<8x8xf32>
    %cst_21 = arith.constant 0.000000e+00 : f32
    %31 = vector.broadcast %cst_21 : f32 to vector<8x8xf32>
    %32 = arith.maximumf %30, %31 : vector<8x8xf32>
    %33 = vector.broadcast %9 : vector<1x8xf32> to vector<8x8xf32>
    %34 = arith.mulf %32, %33 : vector<8x8xf32>
    %35 = vector.broadcast %10 : vector<1x8xf32> to vector<8x8xf32>
    %36 = arith.addf %34, %35 : vector<8x8xf32>
    %37 = vector.broadcast %11 : vector<1x8xf32> to vector<8x8xf32>
    %38 = arith.mulf %36, %37 : vector<8x8xf32>
    %cst_22 = arith.constant dense<0.000000e+00> : vector<8xf32>
    %39 = vector.multi_reduction <add>, %38, %cst_22 [1] : vector<8x8xf32> to vector<8xf32>
    %40 = vector.shape_cast %39 : vector<8xf32> to vector<8x1xf32>
    %c0_23 = arith.constant 0 : index
    %c0_24 = arith.constant 0 : index
    %41 = vector.load %arg4[%c0_23, %c0_24] : memref<8x1xf32, #tpu.memory_space<vmem>>, vector<8x1xf32>
    tpu.vector_store %arg4[%c0_23, %c0_24], %40 {strides = array<i32>} : memref<8x1xf32, #tpu.memory_space<vmem>>, vector<8x1xf32>,
    return
  }
  func.func @transform_0(%arg0: i32) -> (i32, i32) {
    %c0_i32 = arith.constant 0 : i32
    %c0_i32_0 = arith.constant 0 : i32
    return %arg0, %c0_i32 : i32, i32
  }
  func.func @transform_1(%arg0: i32) -> (i32, i32) {
    %c0_i32 = arith.constant 0 : i32
    %c0_i32_0 = arith.constant 0 : i32
    return %arg0, %c0_i32 : i32, i32
  }
  func.func @transform_2(%arg0: i32) -> (i32, i32) {
    %c0_i32 = arith.constant 0 : i32
    %c0_i32_0 = arith.constant 0 : i32
    %c0_i32_1 = arith.constant 0 : i32
    return %c0_i32, %c0_i32_0 : i32, i32
  }
  func.func @transform_3(%arg0: i32) -> (i32, i32) {
    %c0_i32 = arith.constant 0 : i32
    %c0_i32_0 = arith.constant 0 : i32
    return %arg0, %c0_i32 : i32, i32
  }
}

</mosaic_0001>

<bundles_post_ra>
// kernel: tpu_custom_call.1
= control target key start
LH: loop header
LB: loop body
LE: loop exit
PB: predicated region body
PF: predicated region fallthrough
CT: control target
= control target key end

     0   :  { %8 = vsyncpa [#allocation3], 0  ;;  %s747_s0 = inlined_call_operand.hbm [shape: f32[8,32], index: 0, kind: input, shape index: {}]   ;;  %s748_s1 = inlined_call_operand.hbm [shape: f32[8,24], index: 1, kind: input, shape index: {}]   ;;  %s749_s2 = inlined_call_operand.hbm [shape: f32[192,128], index: 2, kind: input, shape index: {}]   ;;  %s750_s3 = inlined_call_operand.vmem [shape: f32[8,1], index: 3, kind: output, shape index: {}]  }
   0x1   :  { %9 = vsyncpa [#allocation5], 0  ;;  %s672_s12 = smov [#allocation4]   ;;  %s673_s14 = smov [#allocation2]  }
   0x2   :  { %s26_s13 = sshll.u32 %s672_s12, 4  ;;  %s16_s15 = sshll.u32 %s673_s14, 4  ;;  %s27_s13 = int_to_ptr.vmem [resolvable:$true] %s26_s13  ;;  %s17_s15 = int_to_ptr.vmem [resolvable:$true] %s16_s15 }
   0x3   :  { %s616_s16 = scalar_lea.vmem %s27_s13, 128  ;;  %p621_p1 = scmp.lt.s32.totalorder %s27_s13, %s27_s13 }
   0x4   :  { %p617_p0 = scmp.ne.s32.totalorder %s27_s13, %s616_s16  ;;  %p622_p2 = scmp.lt.s32.totalorder %s616_s16, %s616_s16 }
   0x6   :  { %p623_p3 = por %p622_p2, %p621_p1 }
   0x8   :  { %p624_p4 = pnand %p623_p3, %p617_p0 }
   0xa   :  { %627 = shalt.err (!%p624_p4)
}
   0xb   :  { %29 = dma.hbm_to_vmem [thread:$0]  %s748_s1, 128, %s27_s13, [#allocation5]  }
   0xc   :  { %s636_s19 = scalar_lea.vmem %s17_s15, 128  ;;  %p641_p6 = scmp.lt.s32.totalorder %s17_s15, %s17_s15 }
   0xd   :  { %p637_p5 = scmp.ne.s32.totalorder %s17_s15, %s636_s19  ;;  %p642_p7 = scmp.lt.s32.totalorder %s636_s19, %s636_s19 }
   0xf   :  { %p643_p8 = por %p642_p7, %p641_p6 }
  0x11   :  { %p644_p9 = pnand %p643_p8, %p637_p5 }
  0x13   :  { %647 = shalt.err (!%p644_p9)
}
  0x14   :  { %19 = dma.hbm_to_vmem [thread:$0]  %s747_s0, 128, %s17_s15, [#allocation3]  }
  0x15   :  { %s674_s22 = smov [#allocation6]  }
  0x16   :  { %s35_s23 = sshll.u32 %s674_s22, 4  ;;  %s36_s23 = int_to_ptr.vmem [resolvable:$true] %s35_s23 }
  0x17   :  { %s656_s24 = scalar_lea.vmem %s36_s23, 3072  ;;  %p661_p11 = scmp.lt.s32.totalorder %s36_s23, %s36_s23 }
  0x18   :  { %p657_p10 = scmp.ne.s32.totalorder %s36_s23, %s656_s24  ;;  %p662_p12 = scmp.lt.s32.totalorder %s656_s24, %s656_s24 }
  0x1a   :  { %p663_p13 = por %p662_p12, %p661_p11 }
  0x1c   :  { %p664_p0 = pnand %p663_p13, %p657_p10 }
  0x1e   :  { %667 = shalt.err (!%p664_p0)
}
  0x1f   :  { %s675_s1 = smov 128   ;;  %s676_s25 = smov 8  }
  0x20   :  { %41 = dma.hbm_to_vmem [thread:$0]  %s749_s2, 3072, %s36_s23, [#allocation5], %s675_s1, %s675_s1, %s676_s25  }
  0x21   :  { %668 = dma.done.wait [#allocation3], 128  }
  0x22   :  { %669 = vsyncadd [#allocation3], 4294967168 }
  0x23   :  { %670 = dma.done.wait [#allocation5], 3200  }
  0x24   :  { %671 = vsyncadd [#allocation5], 4294964096  ;;  %v677_v0 = vmov 0.0   ;;  %vm678_vm0 = vmmov 0   ;;  %v57_v1 = vld [vmem:[#allocation6 + $0x30] sm:$0xff]  ;;  %v54_v2 = vld [vmem:[#allocation6 + $0x18] sm:$0xff] }
  0x25   :  { %538 = vmatprep.subr.mxu0 %v677_v0  ;;  %547 = vmatprep.subr.mxu1 %v677_v0  ;;  %v56_v3 = vld [vmem:[#allocation6 + $0x28] sm:$0xff]  ;;  %v53_v4 = vld [vmem:[#allocation6 + $0x10] sm:$0xff]  ;;  %v55_v5 = vld [vmem:[#allocation6 + $0x20] sm:$0xff]  ;;  %vm83_vm1 = vcmask 195584   ;;  %vm157_vm2 = vcmask 261120   ;;  %vm319_vm3 = vcmask 523264  }
  0x26   :  { %544 = vmatprep.mubr.msk.f32.mxu0 %vm678_vm0, %v677_v0  ;;  %555 = vmatprep.mubr.msk.f32.mxu1 %vm678_vm0, %v677_v0  ;;  %v52_v6 = vld [vmem:[#allocation6 + $0x8] sm:$0xff]  ;;  %v82_v7 = vld [vmem:[#allocation4] sm:$0xff]  ;;  %v51_v8 = vld [vmem:[#allocation6] sm:$0xff]  ;;  %vm486_vm4 = vcmask 64512   ;;  %vm490_vm5 = vcmask 7168  }
  0x27   :  { %539 = vmatpush3.msra.mxu0 %v57_v1  ;;  %548 = vmatpush3.msra.mxu1 %v54_v2  ;;  %v81_v9 = vld [vmem:[#allocation2] sm:$0xff]  ;;  %v60_v11 = vld [vmem:[#allocation6 + $0x48] sm:$0xff]  ;;  %v59_v12 = vld [vmem:[#allocation6 + $0x40] sm:$0xff] }
  0x28   :  { %540 = vmatprep.subr.mxu0 %v677_v0  ;;  %549 = vmatprep.subr.mxu1 %v677_v0  ;;  %v61_v10 = vld [vmem:[#allocation6 + $0x50] sm:$0xff]  ;;  %v58_v13 = vld [vmem:[#allocation6 + $0x38] sm:$0xff]  ;;  %v68_v15 = vld [vmem:[#allocation6 + $0x88] sm:$0xff] }
  0x29   :  { %541 = vmatpush3.msra.mxu0 %v56_v3  ;;  %550 = vmatpush3.msra.mxu1 %v53_v4  ;;  %v69_v14 = vld [vmem:[#allocation6 + $0x90] sm:$0xff]  ;;  %v67_v16 = vld [vmem:[#allocation6 + $0x80] sm:$0xff]  ;;  %v66_v17 = vld [vmem:[#allocation6 + $0x78] sm:$0xff] }
  0x2a   :  { %542 = vmatprep.subr.mxu0 %v677_v0  ;;  %551 = vmatprep.subr.mxu1 %v677_v0  ;;  %v65_v18 = vld [vmem:[#allocation6 + $0x70] sm:$0xff]  ;;  %v500_v21 = vld [vmem:[#allocation6 + $0xb8] ss:$0 sm:$0xff]  ;;  %v64_v27 = vld [vmem:[#allocation6 + $0x68] sm:$0xff] }
  0x2b   :  { %543 = vmatpush3.msra.mxu0 %v55_v5  ;;  %552 = vmatpush3.msra.mxu1 %v52_v6  ;;  %v63_v28 = vld [vmem:[#allocation6 + $0x60] sm:$0xff]  ;;  %v62_v29 = vld [vmem:[#allocation6 + $0x58] sm:$0xff]  ;;  %v73_v30 = vld [vmem:[#allocation6 + $0xb0] sm:$0xff] }
  0x2c   :  { %545 = vmatmul.mubr.msk.f32.vlgmr.msra.gmra.mxu0 %vm83_vm1, %v82_v7  ;;  %553 = vmatprep.subr.mxu1 %v677_v0  ;;  %v72_v31 = vld [vmem:[#allocation6 + $0xa8] sm:$0xff]  ;;  %v501_v32 = vld [vmem:[#allocation6 + $0xb9] ss:$0 sm:$0xff]  ;;  %v71_v37 = vld [vmem:[#allocation6 + $0xa0] sm:$0xff] }
  0x2d   :  { %554 = vmatpush3.msra.mxu1 %v51_v8  ;;  %558 = vmatprep.subr.mxu0 %v677_v0  ;;  %v70_v38 = vld [vmem:[#allocation6 + $0x98] sm:$0xff] }
  0x2e   :  { %556 = vmatmul.mubr.msk.f32.vlgmr.msra.gmra.mxu1 %vm157_vm2, %v81_v9  ;;  %566 = vmatprep.mubr.msk.f32.mxu0 %vm678_vm0, %v677_v0  ;;  %v503_v39 = vld [vmem:[#allocation6 + $0xba] ss:$0 sm:$0xff]  ;;  %v505_v43 = vld [vmem:[#allocation6 + $0xbb] ss:$0 sm:$0xff]  ;;  %v507_v46 = vld [vmem:[#allocation6 + $0xbc] ss:$0 sm:$0xff] }
  0x2f   :  { %569 = vmatprep.subr.mxu1 %v677_v0  ;;  %585 = vmatprep.mubr.msk.f32.mxu1 %vm678_vm0, %v677_v0  ;;  %v508_v49 = vld [vmem:[#allocation6 + $0xbd] ss:$0 sm:$0xff]  ;;  %v509_v51 = vld [vmem:[#allocation6 + $0xbe] ss:$0 sm:$0xff] }
  0x30   :  { %559 = vmatpush3.msra.mxu0 %v61_v10  ;;  %570 = vmatpush3.msra.mxu1 %v69_v14 }
  0x31   :  { %560 = vmatprep.subr.mxu0 %v677_v0  ;;  %571 = vmatprep.subr.mxu1 %v677_v0 }
  0x32   :  { %561 = vmatpush3.msra.mxu0 %v60_v11  ;;  %572 = vmatpush3.msra.mxu1 %v68_v15 }
  0x33   :  { %562 = vmatprep.subr.mxu0 %v677_v0  ;;  %573 = vmatprep.subr.mxu1 %v677_v0 }
  0x34   :  { %563 = vmatpush3.msra.mxu0 %v59_v12  ;;  %574 = vmatpush3.msra.mxu1 %v67_v16 }
  0x35   :  { %564 = vmatprep.subr.mxu0 %v677_v0  ;;  %575 = vmatprep.subr.mxu1 %v677_v0 }
  0x36   :  { %565 = vmatpush3.msra.mxu0 %v58_v13  ;;  %576 = vmatpush3.msra.mxu1 %v66_v17 }
  0x37   :  { %588 = vmatprep.subr.mxu0 %v677_v0  ;;  %577 = vmatprep.subr.mxu1 %v677_v0 }
  0x38   :  { %578 = vmatpush3.msra.mxu1 %v65_v18 }
  0x39   :  { %579 = vmatprep.subr.mxu1 %v677_v0 }
  0x3a   :  { %580 = vmatpush3.msra.mxu1 %v64_v27 }
  0x3b   :  { %581 = vmatprep.subr.mxu1 %v677_v0 }
  0x3c   :  { %582 = vmatpush3.msra.mxu1 %v63_v28 }
  0x3d   :  { %583 = vmatprep.subr.mxu1 %v677_v0 }
  0x3e   :  { %584 = vmatpush3.msra.mxu1 %v62_v29 }
  0xec   :  { %v153_v19 = vpop.f32.mrf.mxu0 }
  0xee   :  { %v546_v20 = vpop.f32.mrf.mxu0  ;;  %v227_v22 = vpop.f32.mrf.mxu1 }
  0xef   :  { %v228_v23 = vadd.f32 %v227_v22, %v153_v19 }
  0xf0   :  { %v557_v24 = vpop.f32.mrf.mxu1 }
  0xf1   :  { %v235_v25 = vadd.f32 %v500_v21, %v228_v23 }
  0xf3   :  { %606 = vtanh.f32 %v235_v25 }
 0x100   :  { %v607_v26 = vpop.eup %606 }
 0x101   :  { %567 = vmatmul.mubr.msk.f32.vlgmr.msra.gmra.mxu0 %vm157_vm2, %v607_v26 }
 0x102   :  { %596 = vmatprep.mubr.msk.f32.mxu0 %vm678_vm0, %v677_v0  ;;  %589 = vmatpush3.msra.mxu0 %v73_v30 }
 0x103   :  { %590 = vmatprep.subr.mxu0 %v677_v0 }
 0x104   :  { %591 = vmatpush3.msra.mxu0 %v72_v31 }
 0x105   :  { %592 = vmatprep.subr.mxu0 %v677_v0 }
 0x106   :  { %593 = vmatpush3.msra.mxu0 %v71_v37 }
 0x107   :  { %594 = vmatprep.subr.mxu0 %v677_v0 }
 0x108   :  { %595 = vmatpush3.msra.mxu0 %v70_v38 }
 0x1c1   :  { %v310_v33 = vpop.f32.mrf.mxu0 }
 0x1c2   :  { %v311_v34 = vadd.f32 %v501_v32, %v310_v33 }
 0x1c3   :  { %v568_v35 = vpop.f32.mrf.mxu0 }
 0x1c4   :  { %v314_v36 = vmax.f32 %v311_v34, 0.0 }
 0x1c6   :  { %586 = vmatmul.mubr.msk.f32.vlgmr.msra.gmra.mxu1 %vm319_vm3, %v314_v36 }
 0x286   :  { %v389_v40 = vpop.f32.mrf.mxu1 }
 0x287   :  { %v390_v41 = vadd.f32 %v503_v39, %v389_v40 }
 0x288   :  { %v587_v42 = vpop.f32.mrf.mxu1 }
 0x289   :  { %597 = vmatmul.mubr.msk.f32.vlgmr.msra.gmra.mxu0 %vm157_vm2, %v390_v41 }
 0x349   :  { %v466_v44 = vpop.f32.mrf.mxu0 }
 0x34a   :  { %v467_v45 = vadd.f32 %v505_v43, %v466_v44 }
 0x34b   :  { %v598_v47 = vpop.f32.mrf.mxu0 }
 0x34c   :  { %v470_v48 = vmax.f32 %v467_v45, 0.0 }
 0x34e   :  { %v475_v50 = vmul.f32 %v507_v46, %v470_v48 }
 0x350   :  { %v480_v52 = vadd.f32 %v508_v49, %v475_v50 }
 0x352   :  { %v485_v53 = vmul.f32 %v509_v51, %v480_v52 }
 0x354   :  { %v487_v54 = vsel %vm486_vm4, %v485_v53, 0.0 }
 0x355   :  { %488 = vadd.xlane.f32.xlu0 %v487_v54 }
 0x3de   :  { %v489_v55 = vpop.xlane.xlu0 %488 }
 0x3df   :  { %491 = vst.msk [vmem:[%s750_s3] sm:$0xff] %vm490_vm5, %v489_v55 }
 0x3e0   :  { %496 = vsyncpa [#allocation3], 1 }
 0x3e1   :  { %497 = vsyncpa [#allocation5], 1 }

</bundles_post_ra>
